<compile_context>
chip_gen: v7x
topology: tpu7x:2x2x1
jax: 0.10.0
libtpu: 0.0.40
codegen_flags: <defaults>
</compile_context>

<pallas_src>
import functools

import jax
import jax.numpy as jnp
from jax import lax
from jax.experimental import pallas as pl
from jax.experimental.pallas import tpu as pltpu


# L at or below this bound: fully unrolled trace-time loop, no VMEM scratch.
_UNROLL_L_MAX = 64


def _lstm_seq_kernel(x_ref, w_ih_ref, w_hh_ref, b_ref, w_lin_t_ref, b_lin_ref,
                     out_ref, *scratch):
    """Single-invocation LSTM over the full sequence; writes pred[-1].

    Expects pre-scaled parameters (i/f/o gate columns of W_ih / W_hh / b
    multiplied by 0.5) so that one tanh + per-lane affine reproduces the
    sigmoid / tanh gate nonlinearities exactly.
    """
    L, input_size = x_ref.shape
    H = w_hh_ref.shape[0]

    # ---- Prologue (off the serial chain) ------------------------------------
    # Hoisted input projection + fused (b_ih + b_hh) bias.  For input_size == 1
    # it is a scalar*vector broadcast -> keep it on the VPU, off the MXU.
    if input_size == 1:
        xproj = x_ref[...] * w_ih_ref[...]            # (L,1)*(1,4H) -> (L,4H)
    else:
        xproj = jnp.dot(x_ref[...], w_ih_ref[...],
                        preferred_element_type=jnp.float32)
    xw = xproj + b_ref[...]                           # (L, 4H), pre-scaled

    # Per-lane affine constants (hoisted): i/f/o lanes -> 0.5*t + 0.5 (sigmoid
    # of the un-scaled gate), g lanes -> identity (tanh).
    lane = lax.broadcasted_iota(jnp.int32, (1, 4 * H), 1)
    is_g = jnp.logical_and(lane >= 2 * H, lane < 3 * H)
    alpha = jnp.where(is_g, jnp.float32(1.0), jnp.float32(0.5))
    beta = jnp.where(is_g, jnp.float32(0.0), jnp.float32(0.5))

    # Keep W_hh resident in vregs across the whole time loop (4 vregs at H=32).
    w_hh = w_hh_ref[...]

    def gate_step(xw_row, h, c):
        # Only the recurrent matmul sits on the serial critical path.
        gates = xw_row + jnp.dot(h, w_hh, preferred_element_type=jnp.float32)
        # Single EUP transcendental per step + one cheap VPU affine.
        act = alpha * jnp.tanh(gates) + beta
        i = act[:, 0 * H:1 * H]
        f = act[:, 1 * H:2 * H]
        g = act[:, 2 * H:3 * H]
        o = act[:, 3 * H:4 * H]
        c = f * c + i * g
        h = o * jnp.tanh(c)
        return h, c

    h = jnp.zeros((1, H), jnp.float32)
    c = jnp.zeros((1, H), jnp.float32)

    if not scratch:
        # Small L: full trace-time unroll, static row indexing of the traced
        # xw value -> no VMEM store/load on the dependency chain.
        for t in range(L):
            h, c = gate_step(xw[t:t + 1, :], h, c)
    else:
        # Large L: park xw in VMEM scratch, partial unroll keeps LLO
        # scheduler visibility without blowing vreg live ranges.
        xw_scr = scratch[0]
        xw_scr[...] = xw

        def body(t, carry):
            hh, cc = carry
            return gate_step(xw_scr[pl.ds(t, 1), :], hh, cc)

        h, c = lax.fori_loop(0, L, body, (h, c), unroll=min(L, 8))

    # ---- Epilogue: pred[-1] on the VPU/XLU (lane-dense w_lin_t) -------------
    # (1,H) * (out,H) -> reduce over H lanes -> (1,out).  Avoids a degenerate
    # N=1 MXU matmul and its push/drain latency in the kernel tail.
    proj = jnp.sum(h * w_lin_t_ref[...], axis=-1)[None, :]
    out_ref[...] = proj + b_lin_ref[...]


def prepare_params(params):
    """One-time (init-side) transform of PyTorch-style params to kernel layout.

    Folds the 0.5 sigmoid pre-scale into the i/f/o gate columns and
    transposes w_lin to a lane-dense (out_size, H) layout.
    """
    H = params["w_hh"].shape[0]
    col = jnp.arange(4 * H)
    is_g = jnp.logical_and(col >= 2 * H, col < 3 * H)
    scale = jnp.where(is_g, jnp.float32(1.0), jnp.float32(0.5))[None, :]
    return {
        "w_ih": params["w_ih"] * scale,        # (input_size, 4H), pre-scaled
        "w_hh": params["w_hh"] * scale,        # (H, 4H), pre-scaled
        "b": params["b"] * scale,              # (1, 4H),  pre-scaled b_ih+b_hh
        "w_lin_t": params["w_lin"].T,          # (out_size, H), lane-dense
        "b_lin": params["b_lin"],              # (1, out_size)
    }


def lstm_sequence_forward(seq, kparams):
    """seq: (L, input_size) float32; kparams from prepare_params().

    Returns pred[-1] of shape (out_size,).
    """
    L, input_size = seq.shape
    H = kparams["w_hh"].shape[0]
    out_size = kparams["w_lin_t"].shape[0]

    small_l = L <= _UNROLL_L_MAX
    scratch_shapes = [] if small_l else [pltpu.VMEM((L, 4 * H), jnp.float32)]

    # VMEM guard (v5e 16 MiB / v6e 32 MiB / v7x 32 MiB scoped defaults, 64 MiB
    # physical on v7x): only raise the limit when the resident footprint
    # actually needs it so the gridless design stays portable.
    fp32 = 4
    footprint = fp32 * (L * input_size + input_size * 4 * H + H * 4 * H
                        + 4 * H + out_size * H + out_size
                        + (0 if small_l else L * 4 * H))
    compiler_params = None
    if footprint * 3 > (16 << 20):
        compiler_params = pltpu.CompilerParams(
            vmem_limit_bytes=min(64 << 20, footprint * 3))

    vmem = lambda: pl.BlockSpec(memory_space=pltpu.MemorySpace.VMEM)
    out = pl.pallas_call(
        _lstm_seq_kernel,
        out_shape=jax.ShapeDtypeStruct((1, out_size), jnp.float32),
        # Whole arrays resident in VMEM: no grid, no per-step DMA pipelining.
        in_specs=[vmem() for _ in range(6)],
        out_specs=vmem(),
        scratch_shapes=scratch_shapes,
        compiler_params=compiler_params,
    )(seq, kparams["w_ih"], kparams["w_hh"], kparams["b"],
      kparams["w_lin_t"], kparams["b_lin"])
    return out[0]                                   # (out_size,)


def lstm_sequence_reference(seq, params):
    """Pure-JAX reference mirroring PyTorch nn.LSTM + nn.Linear, pred[-1]."""
    H = params["w_hh"].shape[0]

    def step(carry, x_t):
        h, c = carry
        gates = (x_t[None, :] @ params["w_ih"] + h @ params["w_hh"]
                 + params["b"])
        i = jax.nn.sigmoid(gates[:, 0 * H:1 * H])
        f = jax.nn.sigmoid(gates[:, 1 * H:2 * H])
        g = jnp.tanh(gates[:, 2 * H:3 * H])
        o = jax.nn.sigmoid(gates[:, 3 * H:4 * H])
        c = f * c + i * g
        h = o * jnp.tanh(c)
        return (h, c), h

    h0 = jnp.zeros((1, H), jnp.float32)
    c0 = jnp.zeros((1, H), jnp.float32)
    (_, _), hs = lax.scan(step, (h0, c0), seq)
    pred = hs[:, 0, :] @ params["w_lin"] + params["b_lin"]
    return pred[-1]


def init_params(key, input_size, hidden_size, out_size):
    """Deterministic PyTorch-style uniform(-1/sqrt(H), 1/sqrt(H)) init."""
    ks = jax.random.split(key, 6)
    H = hidden_size
    s = 1.0 / jnp.sqrt(jnp.float32(H))
    w_ih = jax.random.uniform(ks[0], (input_size, 4 * H), jnp.float32, -s, s)
    w_hh = jax.random.uniform(ks[1], (H, 4 * H), jnp.float32, -s, s)
    b_ih = jax.random.uniform(ks[2], (1, 4 * H), jnp.float32, -s, s)
    b_hh = jax.random.uniform(ks[3], (1, 4 * H), jnp.float32, -s, s)
    w_lin = jax.random.uniform(ks[4], (H, out_size), jnp.float32, -s, s)
    b_lin = jax.random.uniform(ks[5], (1, out_size), jnp.float32, -s, s)
    return {"w_ih": w_ih, "w_hh": w_hh, "b": b_ih + b_hh,
            "w_lin": w_lin, "b_lin": b_lin}


if __name__ == "__main__":
    # Small shapes consistent with the module: input_size=1, hidden=32,
    # out_size=1, seq_len=8.
    SEQ_LEN, INPUT_SIZE, HIDDEN, OUT_SIZE = 8, 1, 32, 1

    key = jax.random.PRNGKey(0)
    k_x, k_p = jax.random.split(key)
    seq = jax.random.normal(k_x, (SEQ_LEN, INPUT_SIZE), jnp.float32)
    params = init_params(k_p, INPUT_SIZE, HIDDEN, OUT_SIZE)
    kernel_params = prepare_params(params)   # one-time, init-side transform

    # TODO(synk): PyTorch module mutates self.hidden across forward calls;
    # this kernel reproduces the first-call (zero initial state) semantics.
    pred_last = jax.block_until_ready(
        lstm_sequence_forward(seq, kernel_params))
    ref = jax.block_until_ready(lstm_sequence_reference(seq, params))

    assert pred_last.shape == (OUT_SIZE,)
    assert jnp.allclose(pred_last, ref, atol=1e-5, rtol=1e-5), (pred_last, ref)

    print("KERNEL_OK")
</pallas_src>

<mosaic_0001>
module attributes {stable_mosaic.version = 11 : i64} {
  func.func @_lstm_seq_kernel(%arg0: memref<8x1xf32, #tpu.memory_space<vmem>>, %arg1: memref<1x128xf32, #tpu.memory_space<vmem>>, %arg2: memref<32x128xf32, #tpu.memory_space<vmem>>, %arg3: memref<1x128xf32, #tpu.memory_space<vmem>>, %arg4: memref<1x32xf32, #tpu.memory_space<vmem>>, %arg5: memref<1x1xf32, #tpu.memory_space<vmem>>, %arg6: memref<1x1xf32, #tpu.memory_space<vmem>>) attributes {dimension_semantics = [], scalar_prefetch = 0 : i64, scratch_operands = 0 : i64, tpu.core_type = #tpu.core_type<tc>} {
    %c0 = arith.constant 0 : index
    %c0_0 = arith.constant 0 : index
    %0 = vector.load %arg0[%c0, %c0_0] : memref<8x1xf32, #tpu.memory_space<vmem>>, vector<8x1xf32>
    %c0_1 = arith.constant 0 : index
    %c0_2 = arith.constant 0 : index
    %1 = vector.load %arg1[%c0_1, %c0_2] : memref<1x128xf32, #tpu.memory_space<vmem>>, vector<1x128xf32>
    %2 = vector.broadcast %0 : vector<8x1xf32> to vector<8x128xf32>
    %3 = vector.broadcast %1 : vector<1x128xf32> to vector<8x128xf32>
    %4 = arith.mulf %2, %3 : vector<8x128xf32>
    %c0_3 = arith.constant 0 : index
    %c0_4 = arith.constant 0 : index
    %5 = vector.load %arg3[%c0_3, %c0_4] : memref<1x128xf32, #tpu.memory_space<vmem>>, vector<1x128xf32>
    %6 = vector.broadcast %5 : vector<1x128xf32> to vector<8x128xf32>
    %7 = arith.addf %4, %6 : vector<8x128xf32>
    %8 = tpu.iota {dimensions = array<i32: 1>} : vector<1x128xi32>
    %c64_i32 = arith.constant 64 : i32
    %9 = vector.broadcast %c64_i32 : i32 to vector<1x128xi32>
    %10 = arith.cmpi sge, %8, %9 : vector<1x128xi32>
    %c96_i32 = arith.constant 96 : i32
    %11 = vector.broadcast %c96_i32 : i32 to vector<1x128xi32>
    %12 = arith.cmpi slt, %8, %11 : vector<1x128xi32>
    %13 = arith.andi %10, %12 : vector<1x128xi1>
    %cst = arith.constant 1.000000e+00 : f32
    %cst_5 = arith.constant 5.000000e-01 : f32
    %14 = vector.broadcast %cst : f32 to vector<1x128xf32>
    %15 = vector.broadcast %cst_5 : f32 to vector<1x128xf32>
    %16 = arith.select %13, %14, %15 : vector<1x128xi1>, vector<1x128xf32>
    %cst_6 = arith.constant 0.000000e+00 : f32
    %cst_7 = arith.constant 5.000000e-01 : f32
    %17 = vector.broadcast %cst_6 : f32 to vector<1x128xf32>
    %18 = vector.broadcast %cst_7 : f32 to vector<1x128xf32>
    %19 = arith.select %13, %17, %18 : vector<1x128xi1>, vector<1x128xf32>
    %c0_8 = arith.constant 0 : index
    %c0_9 = arith.constant 0 : index
    %20 = vector.load %arg2[%c0_8, %c0_9] : memref<32x128xf32, #tpu.memory_space<vmem>>, vector<32x128xf32>
    %cst_10 = arith.constant 0.000000e+00 : f32
    %21 = vector.broadcast %cst_10 : f32 to vector<1x32xf32>
    %cst_11 = arith.constant 0.000000e+00 : f32
    %22 = vector.broadcast %cst_11 : f32 to vector<1x32xf32>
    %23 = vector.extract_strided_slice %7 {offsets = [0, 0], sizes = [1, 128], strides = [1, 1]} : vector<8x128xf32> to vector<1x128xf32>
    %cst_12 = arith.constant dense<0.000000e+00> : vector<1x128xf32>
    %24 = tpu.matmul %21, %20, %cst_12 {dimension_numbers = #tpu.dot_dimension_numbers<[1], [0], [0], [1], [0, 0, 1, 1], [], []>} : vector<1x32xf32>, vector<32x128xf32>, vector<1x128xf32> -> vector<1x128xf32>
    %25 = arith.addf %23, %24 : vector<1x128xf32>
    %26 = math.tanh %25 : vector<1x128xf32>
    %27 = arith.mulf %16, %26 : vector<1x128xf32>
    %28 = arith.addf %27, %19 : vector<1x128xf32>
    %29 = vector.extract_strided_slice %28 {offsets = [0, 0], sizes = [1, 32], strides = [1, 1]} : vector<1x128xf32> to vector<1x32xf32>
    %30 = vector.extract_strided_slice %28 {offsets = [0, 32], sizes = [1, 32], strides = [1, 1]} : vector<1x128xf32> to vector<1x32xf32>
    %31 = vector.extract_strided_slice %28 {offsets = [0, 64], sizes = [1, 32], strides = [1, 1]} : vector<1x128xf32> to vector<1x32xf32>
    %32 = vector.extract_strided_slice %28 {offsets = [0, 96], sizes = [1, 32], strides = [1, 1]} : vector<1x128xf32> to vector<1x32xf32>
    %33 = arith.mulf %30, %22 : vector<1x32xf32>
    %34 = arith.mulf %29, %31 : vector<1x32xf32>
    %35 = arith.addf %33, %34 : vector<1x32xf32>
    %36 = math.tanh %35 : vector<1x32xf32>
    %37 = arith.mulf %32, %36 : vector<1x32xf32>
    %38 = vector.extract_strided_slice %7 {offsets = [1, 0], sizes = [1, 128], strides = [1, 1]} : vector<8x128xf32> to vector<1x128xf32>
    %cst_13 = arith.constant dense<0.000000e+00> : vector<1x128xf32>
    %39 = tpu.matmul %37, %20, %cst_13 {dimension_numbers = #tpu.dot_dimension_numbers<[1], [0], [0], [1], [0, 0, 1, 1], [], []>} : vector<1x32xf32>, vector<32x128xf32>, vector<1x128xf32> -> vector<1x128xf32>
    %40 = arith.addf %38, %39 : vector<1x128xf32>
    %41 = math.tanh %40 : vector<1x128xf32>
    %42 = arith.mulf %16, %41 : vector<1x128xf32>
    %43 = arith.addf %42, %19 : vector<1x128xf32>
    %44 = vector.extract_strided_slice %43 {offsets = [0, 0], sizes = [1, 32], strides = [1, 1]} : vector<1x128xf32> to vector<1x32xf32>
    %45 = vector.extract_strided_slice %43 {offsets = [0, 32], sizes = [1, 32], strides = [1, 1]} : vector<1x128xf32> to vector<1x32xf32>
    %46 = vector.extract_strided_slice %43 {offsets = [0, 64], sizes = [1, 32], strides = [1, 1]} : vector<1x128xf32> to vector<1x32xf32>
    %47 = vector.extract_strided_slice %43 {offsets = [0, 96], sizes = [1, 32], strides = [1, 1]} : vector<1x128xf32> to vector<1x32xf32>
    %48 = arith.mulf %45, %35 : vector<1x32xf32>
    %49 = arith.mulf %44, %46 : vector<1x32xf32>
    %50 = arith.addf %48, %49 : vector<1x32xf32>
    %51 = math.tanh %50 : vector<1x32xf32>
    %52 = arith.mulf %47, %51 : vector<1x32xf32>
    %53 = vector.extract_strided_slice %7 {offsets = [2, 0], sizes = [1, 128], strides = [1, 1]} : vector<8x128xf32> to vector<1x128xf32>
    %cst_14 = arith.constant dense<0.000000e+00> : vector<1x128xf32>
    %54 = tpu.matmul %52, %20, %cst_14 {dimension_numbers = #tpu.dot_dimension_numbers<[1], [0], [0], [1], [0, 0, 1, 1], [], []>} : vector<1x32xf32>, vector<32x128xf32>, vector<1x128xf32> -> vector<1x128xf32>
    %55 = arith.addf %53, %54 : vector<1x128xf32>
    %56 = math.tanh %55 : vector<1x128xf32>
    %57 = arith.mulf %16, %56 : vector<1x128xf32>
    %58 = arith.addf %57, %19 : vector<1x128xf32>
    %59 = vector.extract_strided_slice %58 {offsets = [0, 0], sizes = [1, 32], strides = [1, 1]} : vector<1x128xf32> to vector<1x32xf32>
    %60 = vector.extract_strided_slice %58 {offsets = [0, 32], sizes = [1, 32], strides = [1, 1]} : vector<1x128xf32> to vector<1x32xf32>
    %61 = vector.extract_strided_slice %58 {offsets = [0, 64], sizes = [1, 32], strides = [1, 1]} : vector<1x128xf32> to vector<1x32xf32>
    %62 = vector.extract_strided_slice %58 {offsets = [0, 96], sizes = [1, 32], strides = [1, 1]} : vector<1x128xf32> to vector<1x32xf32>
    %63 = arith.mulf %60, %50 : vector<1x32xf32>
    %64 = arith.mulf %59, %61 : vector<1x32xf32>
    %65 = arith.addf %63, %64 : vector<1x32xf32>
    %66 = math.tanh %65 : vector<1x32xf32>
    %67 = arith.mulf %62, %66 : vector<1x32xf32>
    %68 = vector.extract_strided_slice %7 {offsets = [3, 0], sizes = [1, 128], strides = [1, 1]} : vector<8x128xf32> to vector<1x128xf32>
    %cst_15 = arith.constant dense<0.000000e+00> : vector<1x128xf32>
    %69 = tpu.matmul %67, %20, %cst_15 {dimension_numbers = #tpu.dot_dimension_numbers<[1], [0], [0], [1], [0, 0, 1, 1], [], []>} : vector<1x32xf32>, vector<32x128xf32>, vector<1x128xf32> -> vector<1x128xf32>
    %70 = arith.addf %68, %69 : vector<1x128xf32>
    %71 = math.tanh %70 : vector<1x128xf32>
    %72 = arith.mulf %16, %71 : vector<1x128xf32>
    %73 = arith.addf %72, %19 : vector<1x128xf32>
    %74 = vector.extract_strided_slice %73 {offsets = [0, 0], sizes = [1, 32], strides = [1, 1]} : vector<1x128xf32> to vector<1x32xf32>
    %75 = vector.extract_strided_slice %73 {offsets = [0, 32], sizes = [1, 32], strides = [1, 1]} : vector<1x128xf32> to vector<1x32xf32>
    %76 = vector.extract_strided_slice %73 {offsets = [0, 64], sizes = [1, 32], strides = [1, 1]} : vector<1x128xf32> to vector<1x32xf32>
    %77 = vector.extract_strided_slice %73 {offsets = [0, 96], sizes = [1, 32], strides = [1, 1]} : vector<1x128xf32> to vector<1x32xf32>
    %78 = arith.mulf %75, %65 : vector<1x32xf32>
    %79 = arith.mulf %74, %76 : vector<1x32xf32>
    %80 = arith.addf %78, %79 : vector<1x32xf32>
    %81 = math.tanh %80 : vector<1x32xf32>
    %82 = arith.mulf %77, %81 : vector<1x32xf32>
    %83 = vector.extract_strided_slice %7 {offsets = [4, 0], sizes = [1, 128], strides = [1, 1]} : vector<8x128xf32> to vector<1x128xf32>
    %cst_16 = arith.constant dense<0.000000e+00> : vector<1x128xf32>
    %84 = tpu.matmul %82, %20, %cst_16 {dimension_numbers = #tpu.dot_dimension_numbers<[1], [0], [0], [1], [0, 0, 1, 1], [], []>} : vector<1x32xf32>, vector<32x128xf32>, vector<1x128xf32> -> vector<1x128xf32>
    %85 = arith.addf %83, %84 : vector<1x128xf32>
    %86 = math.tanh %85 : vector<1x128xf32>
    %87 = arith.mulf %16, %86 : vector<1x128xf32>
    %88 = arith.addf %87, %19 : vector<1x128xf32>
    %89 = vector.extract_strided_slice %88 {offsets = [0, 0], sizes = [1, 32], strides = [1, 1]} : vector<1x128xf32> to vector<1x32xf32>
    %90 = vector.extract_strided_slice %88 {offsets = [0, 32], sizes = [1, 32], strides = [1, 1]} : vector<1x128xf32> to vector<1x32xf32>
    %91 = vector.extract_strided_slice %88 {offsets = [0, 64], sizes = [1, 32], strides = [1, 1]} : vector<1x128xf32> to vector<1x32xf32>
    %92 = vector.extract_strided_slice %88 {offsets = [0, 96], sizes = [1, 32], strides = [1, 1]} : vector<1x128xf32> to vector<1x32xf32>
    %93 = arith.mulf %90, %80 : vector<1x32xf32>
    %94 = arith.mulf %89, %91 : vector<1x32xf32>
    %95 = arith.addf %93, %94 : vector<1x32xf32>
    %96 = math.tanh %95 : vector<1x32xf32>
    %97 = arith.mulf %92, %96 : vector<1x32xf32>
    %98 = vector.extract_strided_slice %7 {offsets = [5, 0], sizes = [1, 128], strides = [1, 1]} : vector<8x128xf32> to vector<1x128xf32>
    %cst_17 = arith.constant dense<0.000000e+00> : vector<1x128xf32>
    %99 = tpu.matmul %97, %20, %cst_17 {dimension_numbers = #tpu.dot_dimension_numbers<[1], [0], [0], [1], [0, 0, 1, 1], [], []>} : vector<1x32xf32>, vector<32x128xf32>, vector<1x128xf32> -> vector<1x128xf32>
    %100 = arith.addf %98, %99 : vector<1x128xf32>
    %101 = math.tanh %100 : vector<1x128xf32>
    %102 = arith.mulf %16, %101 : vector<1x128xf32>
    %103 = arith.addf %102, %19 : vector<1x128xf32>
    %104 = vector.extract_strided_slice %103 {offsets = [0, 0], sizes = [1, 32], strides = [1, 1]} : vector<1x128xf32> to vector<1x32xf32>
    %105 = vector.extract_strided_slice %103 {offsets = [0, 32], sizes = [1, 32], strides = [1, 1]} : vector<1x128xf32> to vector<1x32xf32>
    %106 = vector.extract_strided_slice %103 {offsets = [0, 64], sizes = [1, 32], strides = [1, 1]} : vector<1x128xf32> to vector<1x32xf32>
    %107 = vector.extract_strided_slice %103 {offsets = [0, 96], sizes = [1, 32], strides = [1, 1]} : vector<1x128xf32> to vector<1x32xf32>
    %108 = arith.mulf %105, %95 : vector<1x32xf32>
    %109 = arith.mulf %104, %106 : vector<1x32xf32>
    %110 = arith.addf %108, %109 : vector<1x32xf32>
    %111 = math.tanh %110 : vector<1x32xf32>
    %112 = arith.mulf %107, %111 : vector<1x32xf32>
    %113 = vector.extract_strided_slice %7 {offsets = [6, 0], sizes = [1, 128], strides = [1, 1]} : vector<8x128xf32> to vector<1x128xf32>
    %cst_18 = arith.constant dense<0.000000e+00> : vector<1x128xf32>
    %114 = tpu.matmul %112, %20, %cst_18 {dimension_numbers = #tpu.dot_dimension_numbers<[1], [0], [0], [1], [0, 0, 1, 1], [], []>} : vector<1x32xf32>, vector<32x128xf32>, vector<1x128xf32> -> vector<1x128xf32>
    %115 = arith.addf %113, %114 : vector<1x128xf32>
    %116 = math.tanh %115 : vector<1x128xf32>
    %117 = arith.mulf %16, %116 : vector<1x128xf32>
    %118 = arith.addf %117, %19 : vector<1x128xf32>
    %119 = vector.extract_strided_slice %118 {offsets = [0, 0], sizes = [1, 32], strides = [1, 1]} : vector<1x128xf32> to vector<1x32xf32>
    %120 = vector.extract_strided_slice %118 {offsets = [0, 32], sizes = [1, 32], strides = [1, 1]} : vector<1x128xf32> to vector<1x32xf32>
    %121 = vector.extract_strided_slice %118 {offsets = [0, 64], sizes = [1, 32], strides = [1, 1]} : vector<1x128xf32> to vector<1x32xf32>
    %122 = vector.extract_strided_slice %118 {offsets = [0, 96], sizes = [1, 32], strides = [1, 1]} : vector<1x128xf32> to vector<1x32xf32>
    %123 = arith.mulf %120, %110 : vector<1x32xf32>
    %124 = arith.mulf %119, %121 : vector<1x32xf32>
    %125 = arith.addf %123, %124 : vector<1x32xf32>
    %126 = math.tanh %125 : vector<1x32xf32>
    %127 = arith.mulf %122, %126 : vector<1x32xf32>
    %128 = vector.extract_strided_slice %7 {offsets = [7, 0], sizes = [1, 128], strides = [1, 1]} : vector<8x128xf32> to vector<1x128xf32>
    %cst_19 = arith.constant dense<0.000000e+00> : vector<1x128xf32>
    %129 = tpu.matmul %127, %20, %cst_19 {dimension_numbers = #tpu.dot_dimension_numbers<[1], [0], [0], [1], [0, 0, 1, 1], [], []>} : vector<1x32xf32>, vector<32x128xf32>, vector<1x128xf32> -> vector<1x128xf32>
    %130 = arith.addf %128, %129 : vector<1x128xf32>
    %131 = math.tanh %130 : vector<1x128xf32>
    %132 = arith.mulf %16, %131 : vector<1x128xf32>
    %133 = arith.addf %132, %19 : vector<1x128xf32>
    %134 = vector.extract_strided_slice %133 {offsets = [0, 0], sizes = [1, 32], strides = [1, 1]} : vector<1x128xf32> to vector<1x32xf32>
    %135 = vector.extract_strided_slice %133 {offsets = [0, 32], sizes = [1, 32], strides = [1, 1]} : vector<1x128xf32> to vector<1x32xf32>
    %136 = vector.extract_strided_slice %133 {offsets = [0, 64], sizes = [1, 32], strides = [1, 1]} : vector<1x128xf32> to vector<1x32xf32>
    %137 = vector.extract_strided_slice %133 {offsets = [0, 96], sizes = [1, 32], strides = [1, 1]} : vector<1x128xf32> to vector<1x32xf32>
    %138 = arith.mulf %135, %125 : vector<1x32xf32>
    %139 = arith.mulf %134, %136 : vector<1x32xf32>
    %140 = arith.addf %138, %139 : vector<1x32xf32>
    %141 = math.tanh %140 : vector<1x32xf32>
    %142 = arith.mulf %137, %141 : vector<1x32xf32>
    %c0_20 = arith.constant 0 : index
    %c0_21 = arith.constant 0 : index
    %143 = vector.load %arg4[%c0_20, %c0_21] : memref<1x32xf32, #tpu.memory_space<vmem>>, vector<1x32xf32>
    %144 = arith.mulf %142, %143 : vector<1x32xf32>
    %cst_22 = arith.constant dense<0.000000e+00> : vector<1xf32>
    %145 = vector.multi_reduction <add>, %144, %cst_22 [1] : vector<1x32xf32> to vector<1xf32>
    %146 = vector.shape_cast %145 : vector<1xf32> to vector<1x1xf32>
    %c0_23 = arith.constant 0 : index
    %c0_24 = arith.constant 0 : index
    %147 = vector.load %arg5[%c0_23, %c0_24] : memref<1x1xf32, #tpu.memory_space<vmem>>, vector<1x1xf32>
    %148 = arith.addf %146, %147 : vector<1x1xf32>
    %c0_25 = arith.constant 0 : index
    %c0_26 = arith.constant 0 : index
    %149 = vector.load %arg6[%c0_25, %c0_26] : memref<1x1xf32, #tpu.memory_space<vmem>>, vector<1x1xf32>
    tpu.vector_store %arg6[%c0_25, %c0_26], %148 {strides = array<i32>} : memref<1x1xf32, #tpu.memory_space<vmem>>, vector<1x1xf32>,
    return
  }
}

</mosaic_0001>

<bundles_post_ra>
// kernel: tpu_custom_call.1
= control target key start
LH: loop header
LB: loop body
LE: loop exit
PB: predicated region body
PF: predicated region fallthrough
CT: control target
= control target key end

     0   :  { %s1419_s0 = inlined_call_operand.vmem [shape: f32[8,1], index: 0, kind: input, shape index: {}]   ;;  %s1420_s1 = inlined_call_operand.vmem [shape: f32[1,128], index: 1, kind: input, shape index: {}]   ;;  %s1421_s2 = inlined_call_operand.hbm [shape: f32[32,128], index: 2, kind: input, shape index: {}]   ;;  %s1422_s3 = inlined_call_operand.vmem [shape: f32[1,128], index: 3, kind: input, shape index: {}]   ;;  %s1423_s4 = inlined_call_operand.vmem [shape: f32[1,32], index: 4, kind: input, shape index: {}]   ;;  %s1424_s5 = inlined_call_operand.<no memory space> [shape: f32[1,1], index: 5, kind: input, shape index: {}]   ;;  %s1425_s6 = inlined_call_operand.hbm [shape: f32[1,1], index: 6, kind: output, shape index: {}]  }
   0x1   :  { %v11_v0 = vstv %s1424_s5 }
   0x2   :  { %12 = vst [vmem:[#allocation2] sm:$0x1] %v11_v0 }
   0x3   :  { %13 = vsyncpa [#allocation4], 0 }
   0x4   :  { %14 = vsyncpa [#allocation5], 0  ;;  %s1211_s23 = smov [#allocation3]   ;;  %s1163_s27 = scalar_lea.hbm %s1421_s2, 512 }
   0x5   :  { %s24_s24 = sshll.u32 %s1211_s23, 4  ;;  %p1164_p0 = scmp.ne.s32.totalorder %s1421_s2, %s1163_s27  ;;  %s25_s24 = int_to_ptr.vmem [resolvable:$true] %s24_s24 }
   0x6   :  { %p1167_p1 = scmp.lt.u32.totalorder %s1163_s27, %s1421_s2 }
   0x8   :  { %p1169_p2 = pnand %p1167_p1, %p1164_p0 }
   0xa   :  { %1172 = shalt.err (!%p1169_p2)
}
   0xb   :  { %s1173_s5 = scalar_lea.vmem %s25_s24, 512  ;;  %p1178_p4 = scmp.lt.s32.totalorder %s25_s24, %s25_s24 }
   0xc   :  { %p1174_p3 = scmp.ne.s32.totalorder %s25_s24, %s1173_s5  ;;  %p1179_p5 = scmp.lt.s32.totalorder %s1173_s5, %s1173_s5 }
   0xe   :  { %p1180_p6 = por %p1179_p5, %p1178_p4 }
  0x10   :  { %p1181_p7 = pnand %p1180_p6, %p1174_p3 }
  0x12   :  { %1184 = shalt.err (!%p1181_p7)
}
  0x13   :  { %s1212_s8 = smov 128   ;;  %s1213_s9 = smov 8  }
  0x14   :  { %30 = dma.hbm_to_vmem [thread:$0]  %s1421_s2, 512, %s25_s24, [#allocation4], %s1212_s8, %s1212_s8, %s1213_s9  }
  0x15   :  { %1207 = dma.done.wait [#allocation4], 512  }
  0x16   :  { %1208 = vsyncadd [#allocation4], 4294966784  ;;  %v1214_v1 = vmov 0.0|0.0   ;;  %vm1215_vm0 = vmmov 0   ;;  %v1216_v2 = vmov 0.0   ;;  %v1217_v3 = vmov 0  }
  0x17   :  { %1070 = vmatprep.subr.bf16.mxu0 %v1214_v1  ;;  %990 = vmatprep.mubr.msk.f32.mxu0 %vm1215_vm0, %v1216_v2  ;;  %v69_v4 = vld [vmem:[#allocation3] sm:$0xff]  ;;  %v70_v5 = vld [vmem:[#allocation3 + $0x8] sm:$0xff]  ;;  %v71_v6 = vld [vmem:[#allocation3 + $0x10] sm:$0xff]  ;;  %v62_v16 = vlaneseq  ;;  %v1218_v21 = vmov 0.5   ;;  %vm73_vm4 = vcmask 261120   ;;  %s1221_s18 = smov 96  }
  0x18   :  { %1130 = vset.pattern.permute.xlu0 %v1217_v3  ;;  %1076 = vmatprep.subr.bf16.mxu1 %v1214_v1  ;;  %v1279_v7 = vpack.c.bf16 %v70_v5, %v69_v4  ;;  %v72_v8 = vld [vmem:[#allocation3 + $0x18] sm:$0xff]  ;;  %vm902_vm5 = vcmask 261127   ;;  %vm914_vm6 = vcmask 7175  }
  0x19   :  { %1001 = vmatprep.mubr.msk.f32.mxu1 %vm1215_vm0, %v1216_v2  ;;  %v40_v9 = vld [vmem:[%s1419_s0] sm:$0xff]  ;;  %v1285_v10 = vpack.c.bf16 %v72_v8, %v71_v6  ;;  %v63_v20 = vand.u32 127, %v62_v16 }
  0x1a   :  { %44 = vperm.xlu0 %1130, %v40_v9   ;;  %1072 = vmatpush3.bf16.msra.mxu0 %v1279_v7  ;;  %v931_v11 = vld [vmem:[%s1420_s1] ss:$0 sm:$0xff]  ;;  %s1219_s1 = smov 64  }
  0x1b   :  { %1078 = vmatpush3.bf16.msra.mxu1 %v1279_v7  ;;  %1073 = vmatprep.subr.bf16.mxu0 %v1214_v1  ;;  %v932_v14 = vld [vmem:[%s1422_s3] ss:$0 sm:$0xff]  ;;  %vm64_vm1 = vcmp.ge.s32.totalorder %v63_v20, 64  ;;  %vm65_vm2 = vcmp.lt.s32.totalorder %v63_v20, 96  ;;  %s1220_s3 = smov 32  }
  0x1c   :  { %1079 = vmatprep.subr.bf16.mxu1 %v1214_v1  ;;  %vm66_vm3 = vmand %vm64_vm1, %vm65_vm2 }
  0x1d   :  { %v1310_v22 = vsel %vm66_vm3, 1.0, %v1218_v21  ;;  %v1312_v24 = vsel %vm66_vm3, 0.0, %v1218_v21 }
  0x1e   :  { %1075 = vmatpush3.bf16.msra.mxu0 %v1285_v10 }
  0x1f   :  { %1081 = vmatpush3.bf16.msra.mxu1 %v1285_v10  ;;  %1082 = vmatprep.subr.bf16.mxu0 %v1214_v1 }
  0x20   :  { %1088 = vmatprep.subr.bf16.mxu1 %v1214_v1 }
  0x21   :  { %991 = vmatmul.mubr.f32.vlgmr.msra.gmra.mrb[0].mxu0 %v1216_v2 }
  0x22   :  { %1084 = vmatpush3.bf16.msra.mxu0 %v1279_v7  ;;  %1012 = vmatprep.mubr.msk.f32.mxu0 %vm1215_vm0, %v1216_v2 }
  0x23   :  { %1085 = vmatprep.subr.bf16.mxu0 %v1214_v1 }
  0x26   :  { %1087 = vmatpush3.bf16.msra.mxu0 %v1285_v10 }
  0x27   :  { %1094 = vmatprep.subr.bf16.mxu0 %v1214_v1 }
  0x99   :  { %v45_v12 = vpop.permute.xlu0 %44 }
  0x9a   :  { %v53_v13 = vmul.f32 %v931_v11, %v45_v12 }
  0x9c   :  { %v1307_v15 = vadd.f32 %v932_v14, %v53_v13 }
  0xf4   :  { %v143_v17 = vpop.f32.mrb[0].mxu0 }
  0xf5   :  { %v147_v18 = vadd.f32 %v143_v17, %v1307_v15  ;;  %v992_v19 = vpop.f32.mrb[1].mxu0 }
  0xf7   :  { %1131 = vtanh.f32 %v147_v18 }
 0x101   :  { %v1132_v23 = vpop.eup %1131 }
 0x102   :  { %v149_v25 = vmul.f32 %v1132_v23, %v1310_v22 }
 0x104   :  { %v150_v26 = vadd.f32 %v149_v25, %v1312_v24 }
 0x106   :  { %153 = vrot.lane.b32.xlu0 %v150_v26, %s1219_s1  ;;  %v151_v29 = vmul.f32 0.0, %v150_v26 }
 0x178   :  { %v154_v27 = vpop.permute.xlu0 %153 }
 0x179   :  { %v156_v28 = vmul.f32 %v154_v27, %v150_v26 }
 0x17b   :  { %158 = vrot.lane.b32.xlu1 %v156_v28, %s1220_s3 }
 0x1ed   :  { %v159_v30 = vpop.permute.xlu1 %158 }
 0x1ee   :  { %v161_v31 = vadd.f32 %v159_v30, %v151_v29 }
 0x1f0   :  { %1133 = vtanh.f32 %v161_v31  ;;  %v251_v45 = vrot.slane %v161_v31, 7 }
 0x1fa   :  { %v1134_v32 = vpop.eup %1133 }
 0x1fb   :  { %164 = vrot.lane.b32.xlu1 %v1134_v32, %s1219_s1 }
 0x26d   :  { %v165_v33 = vpop.permute.xlu1 %164 }
 0x26e   :  { %v167_v34 = vmul.f32 %v165_v33, %v150_v26 }
 0x270   :  { %169 = vrot.lane.b32.xlu0 %v167_v34, %s1220_s3 }
 0x2e2   :  { %v170_v35 = vpop.permute.xlu0 %169 }
 0x2e3   :  { %1002 = vmatmul.mubr.msk.f32.vlgmr.msra.gmra.mrb[0].mxu1 %vm73_vm4, %v170_v35 }
 0x2e4   :  { %1090 = vmatpush3.bf16.msra.mxu1 %v1279_v7  ;;  %1023 = vmatprep.mubr.msk.f32.mxu1 %vm1215_vm0, %v1216_v2 }
 0x2e5   :  { %1091 = vmatprep.subr.bf16.mxu1 %v1214_v1 }
 0x2e8   :  { %1093 = vmatpush3.bf16.msra.mxu1 %v1285_v10 }
 0x2e9   :  { %1100 = vmatprep.subr.bf16.mxu1 %v1214_v1 }
 0x3b6   :  { %v239_v36 = vpop.f32.mrb[0].mxu1 }
 0x3b7   :  { %v244_v37 = vrot.slane %v239_v36, 7  ;;  %v1003_v38 = vpop.f32.mrb[1].mxu1 }
 0x3b9   :  { %v246_v39 = vadd.f32 %v244_v37, %v1307_v15 }
 0x3bb   :  { %1135 = vtanh.f32 %v246_v39 }
 0x3c5   :  { %v1136_v40 = vpop.eup %1135 }
 0x3c6   :  { %v248_v41 = vmul.f32 %v1136_v40, %v1310_v22 }
 0x3c8   :  { %v249_v42 = vadd.f32 %v248_v41, %v1312_v24 }
 0x3ca   :  { %255 = vrot.lane.b32.xlu1 %v249_v42, %s1219_s1  ;;  %v253_v46 = vmul.f32 %v251_v45, %v249_v42 }
 0x43c   :  { %v256_v43 = vpop.permute.xlu1 %255 }
 0x43d   :  { %v258_v44 = vmul.f32 %v256_v43, %v249_v42 }
 0x43f   :  { %260 = vrot.lane.b32.xlu0 %v258_v44, %s1220_s3 }
 0x4b1   :  { %v261_v47 = vpop.permute.xlu0 %260 }
 0x4b2   :  { %v263_v48 = vadd.f32 %v261_v47, %v253_v46 }
 0x4b4   :  { %1137 = vtanh.f32 %v263_v48  ;;  %v354_v63 = vrot.slane %v263_v48, 7 }
 0x4be   :  { %v1138_v49 = vpop.eup %1137 }
 0x4bf   :  { %266 = vrot.lane.b32.xlu1 %v1138_v49, %s1219_s1 }
 0x531   :  { %v267_v50 = vpop.permute.xlu1 %266 }
 0x532   :  { %v269_v51 = vmul.f32 %v267_v50, %v249_v42 }
 0x534   :  { %v271_v52 = vrot.slane %v269_v51, 1 }
 0x536   :  { %272 = vrot.lane.b32.xlu0 %v271_v52, %s1220_s3 }
 0x5a8   :  { %v273_v53 = vpop.permute.xlu0 %272 }
 0x5a9   :  { %1013 = vmatmul.mubr.msk.f32.vlgmr.msra.gmra.mrb[2].mxu0 %vm73_vm4, %v273_v53 }
 0x5aa   :  { %1096 = vmatpush3.bf16.msra.mxu0 %v1279_v7  ;;  %1034 = vmatprep.mubr.msk.f32.mxu0 %vm1215_vm0, %v1216_v2 }
 0x5ab   :  { %1097 = vmatprep.subr.bf16.mxu0 %v1214_v1 }
 0x5ae   :  { %1099 = vmatpush3.bf16.msra.mxu0 %v1285_v10 }
 0x5af   :  { %1106 = vmatprep.subr.bf16.mxu0 %v1214_v1 }
 0x67c   :  { %v342_v54 = vpop.f32.mrb[2].mxu0 }
 0x67d   :  { %v347_v55 = vrot.slane %v342_v54, 6  ;;  %v1014_v56 = vpop.f32.mrb[3].mxu0 }
 0x67f   :  { %v349_v57 = vadd.f32 %v347_v55, %v1307_v15 }
 0x681   :  { %1139 = vtanh.f32 %v349_v57 }
 0x68b   :  { %v1140_v58 = vpop.eup %1139 }
 0x68c   :  { %v351_v59 = vmul.f32 %v1140_v58, %v1310_v22 }
 0x68e   :  { %v352_v60 = vadd.f32 %v351_v59, %v1312_v24 }
 0x690   :  { %358 = vrot.lane.b32.xlu1 %v352_v60, %s1219_s1  ;;  %v356_v0 = vmul.f32 %v354_v63, %v352_v60 }
 0x702   :  { %v359_v61 = vpop.permute.xlu1 %358 }
 0x703   :  { %v361_v62 = vmul.f32 %v359_v61, %v352_v60 }
 0x705   :  { %363 = vrot.lane.b32.xlu0 %v361_v62, %s1220_s3 }
 0x777   :  { %v364_v3 = vpop.permute.xlu0 %363 }
 0x778   :  { %v366_v4 = vadd.f32 %v364_v3, %v356_v0 }
 0x77a   :  { %1141 = vtanh.f32 %v366_v4  ;;  %v457_v23 = vrot.slane %v366_v4, 7 }
 0x784   :  { %v1142_v5 = vpop.eup %1141 }
 0x785   :  { %369 = vrot.lane.b32.xlu1 %v1142_v5, %s1219_s1 }
 0x7f7   :  { %v370_v6 = vpop.permute.xlu1 %369 }
 0x7f8   :  { %v372_v8 = vmul.f32 %v370_v6, %v352_v60 }
 0x7fa   :  { %v374_v9 = vrot.slane %v372_v8, 2 }
 0x7fc   :  { %375 = vrot.lane.b32.xlu0 %v374_v9, %s1220_s3 }
 0x86e   :  { %v376_v11 = vpop.permute.xlu0 %375 }
 0x86f   :  { %1024 = vmatmul.mubr.msk.f32.vlgmr.msra.gmra.mrb[2].mxu1 %vm73_vm4, %v376_v11 }
 0x870   :  { %1102 = vmatpush3.bf16.msra.mxu1 %v1279_v7  ;;  %1045 = vmatprep.mubr.msk.f32.mxu1 %vm1215_vm0, %v1216_v2 }
 0x871   :  { %1103 = vmatprep.subr.bf16.mxu1 %v1214_v1 }
 0x874   :  { %1105 = vmatpush3.bf16.msra.mxu1 %v1285_v10 }
 0x875   :  { %1112 = vmatprep.subr.bf16.mxu1 %v1214_v1 }
 0x942   :  { %v445_v12 = vpop.f32.mrb[2].mxu1 }
 0x943   :  { %v450_v13 = vrot.slane %v445_v12, 5  ;;  %v1025_v14 = vpop.f32.mrb[3].mxu1 }
 0x945   :  { %v452_v16 = vadd.f32 %v450_v13, %v1307_v15 }
 0x947   :  { %1143 = vtanh.f32 %v452_v16 }
 0x951   :  { %v1144_v17 = vpop.eup %1143 }
 0x952   :  { %v454_v18 = vmul.f32 %v1144_v17, %v1310_v22 }
 0x954   :  { %v455_v19 = vadd.f32 %v454_v18, %v1312_v24 }
 0x956   :  { %461 = vrot.lane.b32.xlu1 %v455_v19, %s1219_s1  ;;  %v459_v25 = vmul.f32 %v457_v23, %v455_v19 }
 0x9c8   :  { %v462_v20 = vpop.permute.xlu1 %461 }
 0x9c9   :  { %v464_v21 = vmul.f32 %v462_v20, %v455_v19 }
 0x9cb   :  { %466 = vrot.lane.b32.xlu0 %v464_v21, %s1220_s3 }
 0xa3d   :  { %v467_v26 = vpop.permute.xlu0 %466 }
 0xa3e   :  { %v469_v27 = vadd.f32 %v467_v26, %v459_v25 }
 0xa40   :  { %1145 = vtanh.f32 %v469_v27  ;;  %v560_v42 = vrot.slane %v469_v27, 7 }
 0xa4a   :  { %v1146_v28 = vpop.eup %1145 }
 0xa4b   :  { %472 = vrot.lane.b32.xlu1 %v1146_v28, %s1219_s1 }
 0xabd   :  { %v473_v29 = vpop.permute.xlu1 %472 }
 0xabe   :  { %v475_v30 = vmul.f32 %v473_v29, %v455_v19 }
 0xac0   :  { %v477_v31 = vrot.slane %v475_v30, 3 }
 0xac2   :  { %478 = vrot.lane.b32.xlu0 %v477_v31, %s1220_s3 }
 0xb34   :  { %v479_v32 = vpop.permute.xlu0 %478 }
 0xb35   :  { %1035 = vmatmul.mubr.msk.f32.vlgmr.msra.gmra.mrb[4].mxu0 %vm73_vm4, %v479_v32 }
 0xb36   :  { %1108 = vmatpush3.bf16.msra.mxu0 %v1279_v7  ;;  %1056 = vmatprep.mubr.msk.f32.mxu0 %vm1215_vm0, %v1216_v2 }
 0xb37   :  { %1109 = vmatprep.subr.bf16.mxu0 %v1214_v1 }
 0xb3a   :  { %1111 = vmatpush3.bf16.msra.mxu0 %v1285_v10 }
 0xc08   :  { %v548_v33 = vpop.f32.mrb[4].mxu0 }
 0xc09   :  { %v553_v34 = vrot.slane %v548_v33, 4  ;;  %v1036_v35 = vpop.f32.mrb[5].mxu0 }
 0xc0a   :  { %v940_v35 = vld [vmem:[%s1423_s4] ss:$0 sm:$0xff]  ;;  %s1222_s4 = smov [#allocation6]  }
 0xc0b   :  { %v555_v36 = vadd.f32 %v553_v34, %v1307_v15  ;;  %s922_s19 = sshll.u32 %s1222_s4, 4  ;;  %s923_s19 = int_to_ptr.vmem [resolvable:$true] %s922_s19 }
 0xc0c   :  { %s1185_s20 = scalar_lea.vmem %s923_s19, 16  ;;  %s1189_s21 = scalar_lea.vmem %s923_s19, 32 }
 0xc0d   :  { %1147 = vtanh.f32 %v555_v36  ;;  %p1186_p8 = scmp.ne.s32.totalorder %s923_s19, %s1185_s20  ;;  %p1190_p9 = scmp.lt.s32.totalorder %s923_s19, %s923_s19 }
 0xc0e   :  { %p1191_p10 = scmp.lt.s32.totalorder %s1189_s21, %s1185_s20 }
 0xc10   :  { %p1192_p11 = por %p1191_p10, %p1190_p9 }
 0xc12   :  { %p1193_p12 = pnand %p1192_p11, %p1186_p8 }
 0xc17   :  { %v1148_v37 = vpop.eup %1147 }
 0xc18   :  { %v557_v38 = vmul.f32 %v1148_v37, %v1310_v22 }
 0xc1a   :  { %v558_v39 = vadd.f32 %v557_v38, %v1312_v24 }
 0xc1c   :  { %564 = vrot.lane.b32.xlu1 %v558_v39, %s1219_s1  ;;  %v562_v43 = vmul.f32 %v560_v42, %v558_v39 }
 0xc8e   :  { %v565_v40 = vpop.permute.xlu1 %564 }
 0xc8f   :  { %v567_v41 = vmul.f32 %v565_v40, %v558_v39 }
 0xc91   :  { %569 = vrot.lane.b32.xlu0 %v567_v41, %s1220_s3 }
 0xd03   :  { %v570_v44 = vpop.permute.xlu0 %569 }
 0xd04   :  { %v572_v45 = vadd.f32 %v570_v44, %v562_v43  ;;  %v941_v44 = vld [vmem:[#allocation2] ss:$0 sm:$0xff] }
 0xd06   :  { %1149 = vtanh.f32 %v572_v45 }
 0xd10   :  { %v1150_v46 = vpop.eup %1149 }
 0xd11   :  { %575 = vrot.lane.b32.xlu1 %v1150_v46, %s1219_s1 }
 0xd83   :  { %v576_v47 = vpop.permute.xlu1 %575 }
 0xd84   :  { %v578_v48 = vmul.f32 %v576_v47, %v558_v39 }
 0xd86   :  { %v580_v49 = vrot.slane %v578_v48, 4 }
 0xd88   :  { %581 = vrot.lane.b32.xlu0 %v580_v49, %s1220_s3 }
 0xdfa   :  { %v582_v50 = vpop.permute.xlu0 %581 }
 0xdfb   :  { %1046 = vmatmul.mubr.msk.f32.vlgmr.msra.gmra.mrb[4].mxu1 %vm73_vm4, %v582_v50 }
 0xdfc   :  { %1114 = vmatpush3.bf16.msra.mxu1 %v1279_v7  ;;  %1067 = vmatprep.mubr.msk.f32.mxu1 %vm1215_vm0, %v1216_v2 }
 0xdfd   :  { %1115 = vmatprep.subr.bf16.mxu1 %v1214_v1  ;;  %v663_v1 = vrot.slane %v572_v45, 7 }
 0xe00   :  { %1117 = vmatpush3.bf16.msra.mxu1 %v1285_v10 }
 0xece   :  { %v651_v51 = vpop.f32.mrb[4].mxu1 }
 0xecf   :  { %v656_v52 = vrot.slane %v651_v51, 3  ;;  %v1047_v53 = vpop.f32.mrb[5].mxu1 }
 0xed1   :  { %v658_v54 = vadd.f32 %v656_v52, %v1307_v15 }
 0xed3   :  { %1151 = vtanh.f32 %v658_v54 }
 0xedd   :  { %v1152_v55 = vpop.eup %1151 }
 0xede   :  { %v660_v56 = vmul.f32 %v1152_v55, %v1310_v22 }
 0xee0   :  { %v661_v57 = vadd.f32 %v660_v56, %v1312_v24 }
 0xee2   :  { %667 = vrot.lane.b32.xlu1 %v661_v57, %s1219_s1  ;;  %v665_v2 = vmul.f32 %v663_v1, %v661_v57 }
 0xf54   :  { %v668_v7 = vpop.permute.xlu1 %667 }
 0xf55   :  { %v670_v58 = vmul.f32 %v668_v7, %v661_v57 }
 0xf57   :  { %672 = vrot.lane.b32.xlu0 %v670_v58, %s1220_s3 }
 0xfc9   :  { %v673_v10 = vpop.permute.xlu0 %672 }
 0xfca   :  { %v675_v59 = vadd.f32 %v673_v10, %v665_v2 }
 0xfcc   :  { %1153 = vtanh.f32 %v675_v59  ;;  %v766_v14 = vrot.slane %v675_v59, 7 }
 0xfd6   :  { %v1154_v60 = vpop.eup %1153 }
 0xfd7   :  { %678 = vrot.lane.b32.xlu1 %v1154_v60, %s1219_s1 }
0x1049   :  { %v679_v61 = vpop.permute.xlu1 %678 }
0x104a   :  { %v681_v62 = vmul.f32 %v679_v61, %v661_v57 }
0x104c   :  { %v683_v63 = vrot.slane %v681_v62, 5 }
0x104e   :  { %684 = vrot.lane.b32.xlu0 %v683_v63, %s1220_s3 }
0x10c0   :  { %v685_v0 = vpop.permute.xlu0 %684 }
0x10c1   :  { %1057 = vmatmul.mubr.msk.f32.vlgmr.msra.gmra.mrb[6].mxu0 %vm73_vm4, %v685_v0 }
0x1194   :  { %v754_v3 = vpop.f32.mrb[6].mxu0 }
0x1195   :  { %v759_v4 = vrot.slane %v754_v3, 2  ;;  %v1058_v5 = vpop.f32.mrb[7].mxu0 }
0x1197   :  { %v761_v6 = vadd.f32 %v759_v4, %v1307_v15 }
0x1199   :  { %1155 = vtanh.f32 %v761_v6 }
0x11a3   :  { %v1156_v8 = vpop.eup %1155 }
0x11a4   :  { %v763_v9 = vmul.f32 %v1156_v8, %v1310_v22 }
0x11a6   :  { %v764_v11 = vadd.f32 %v763_v9, %v1312_v24 }
0x11a8   :  { %770 = vrot.lane.b32.xlu1 %v764_v11, %s1219_s1  ;;  %v768_v16 = vmul.f32 %v766_v14, %v764_v11 }
0x121a   :  { %v771_v12 = vpop.permute.xlu1 %770 }
0x121b   :  { %v773_v13 = vmul.f32 %v771_v12, %v764_v11 }
0x121d   :  { %775 = vrot.lane.b32.xlu0 %v773_v13, %s1220_s3 }
0x128f   :  { %v776_v17 = vpop.permute.xlu0 %775 }
0x1290   :  { %v778_v18 = vadd.f32 %v776_v17, %v768_v16 }
0x1292   :  { %1157 = vtanh.f32 %v778_v18  ;;  %v869_v36 = vrot.slane %v778_v18, 7 }
0x129c   :  { %v1158_v19 = vpop.eup %1157 }
0x129d   :  { %781 = vrot.lane.b32.xlu1 %v1158_v19, %s1219_s1 }
0x130f   :  { %v782_v20 = vpop.permute.xlu1 %781 }
0x1310   :  { %v784_v21 = vmul.f32 %v782_v20, %v764_v11 }
0x1312   :  { %v786_v23 = vrot.slane %v784_v21, 6 }
0x1314   :  { %787 = vrot.lane.b32.xlu0 %v786_v23, %s1220_s3 }
0x1386   :  { %v788_v25 = vpop.permute.xlu0 %787 }
0x1387   :  { %1068 = vmatmul.mubr.msk.f32.vlgmr.msra.gmra.mrb[6].mxu1 %vm73_vm4, %v788_v25 }
0x145a   :  { %v857_v26 = vpop.f32.mrb[6].mxu1 }
0x145b   :  { %v862_v27 = vrot.slane %v857_v26, 1  ;;  %v1069_v28 = vpop.f32.mrb[7].mxu1 }
0x145d   :  { %v864_v29 = vadd.f32 %v862_v27, %v1307_v15 }
0x145f   :  { %1159 = vtanh.f32 %v864_v29 }
0x1469   :  { %v1160_v30 = vpop.eup %1159 }
0x146a   :  { %v866_v31 = vmul.f32 %v1160_v30, %v1310_v22 }
0x146c   :  { %v867_v32 = vadd.f32 %v866_v31, %v1312_v24 }
0x146e   :  { %873 = vrot.lane.b32.xlu1 %v867_v32, %s1219_s1  ;;  %v871_v15 = vmul.f32 %v869_v36, %v867_v32 }
0x14e0   :  { %v874_v33 = vpop.permute.xlu1 %873 }
0x14e1   :  { %v876_v34 = vmul.f32 %v874_v33, %v867_v32 }
0x14e3   :  { %878 = vrot.lane.b32.xlu0 %v876_v34, %s1220_s3 }
0x14e7   :  { %894 = vrot.lane.b32.xlu0 %v940_v35, %s1221_s18 }
0x1555   :  { %v879_v37 = vpop.permute.xlu0 %878 }
0x1556   :  { %v881_v38 = vadd.f32 %v879_v37, %v871_v15 }
0x1558   :  { %1161 = vtanh.f32 %v881_v38 }
0x1559   :  { %v895_v39 = vpop.permute.xlu0 %894 }
0x1562   :  { %v1162_v22 = vpop.eup %1161 }
0x1563   :  { %884 = vrot.lane.b32.xlu1 %v1162_v22, %s1219_s1 }
0x15d5   :  { %v885_v24 = vpop.permute.xlu1 %884 }
0x15d6   :  { %v887_v40 = vmul.f32 %v885_v24, %v867_v32 }
0x15d8   :  { %v897_v41 = vmul.f32 %v895_v39, %v887_v40 }
0x15da   :  { %899 = vrot.lane.b32.xlu1 %v897_v41, %s1220_s3 }
0x164c   :  { %v900_v42 = vpop.permute.xlu1 %899 }
0x164d   :  { %v903_v43 = vsel %vm902_vm5, %v900_v42, 0.0 }
0x164e   :  { %904 = vadd.xlane.f32.xlu0 %v903_v43 }
0x16db   :  { %v905_v45 = vpop.xlane.xlu0 %904 }
0x16dc   :  { %v913_v46 = vadd.f32 %v941_v44, %v905_v45 }
0x16de   :  { %915 = vst.msk [vmem:[#allocation6 - $0x7] sm:$0x80] %vm914_vm6, %v913_v46 }
0x16df   :  { %1196 = shalt.err (!%p1193_p12)
}
0x16e0   :  { %s1197_s24 = scalar_lea.hbm %s1425_s6, 16 }
0x16e1   :  { %p1198_p13 = scmp.ne.s32.totalorder %s1425_s6, %s1197_s24  ;;  %p1201_p0 = scmp.lt.u32.totalorder %s1197_s24, %s1425_s6 }
0x16e3   :  { %p1203_p1 = pnand %p1201_p0, %p1198_p13 }
0x16e5   :  { %1206 = shalt.err (!%p1203_p1)
}
0x16e6   :  { %925 = dma.vmem_to_hbm [thread:$0]  %s923_s19, 16, %s1425_s6, [#allocation5]  }
0x16e7   :  { %1209 = dma.done.wait [#allocation5], 16  }
0x16e8   :  { %1210 = vsyncadd [#allocation5], 4294967280 }
0x16e9   :  { %929 = vsyncpa [#allocation4], 1 }
0x16ea   :  { %930 = vsyncpa [#allocation5], 1 }

</bundles_post_ra>
